<compile_context>
chip_gen: v7x
topology: tpu7x:2x2x1
jax: 0.10.0
libtpu: 0.0.40
codegen_flags: <defaults>
</compile_context>

<pallas_src>
import math
import jax
import jax.numpy as jnp
from jax.experimental import pallas as pl
from jax.experimental.pallas import tpu as pltpu


N_FFT = 256
STRIDE = 128
TO_PAD = 64
CUTOFF = N_FFT // 2 + 1     # 129
TL_TARGET = 512             # frames per tile (multiple of 256 for full MXU feeding)


def _round_up(x, m):
    return (x + m - 1) // m * m


def stft_mag_kernel(lo_ref, hi_ref, w_ref, out_ref):
    # lo_ref/hi_ref: (1, TL, 128)    first / second 128-sample half of each frame
    # w_ref        : (n_fft, 2*cpad) fused [real | imag] basis (each half lane-padded)
    # out_ref      : (1, cutoff, TL) magnitude, already channel-major (final layout)
    cpad = w_ref.shape[1] // 2
    cutoff = out_ref.shape[1]

    # Build the (TL, 256) frame tile in VMEM (lane concat at 128 boundary, no HBM gather).
    frames = jnp.concatenate([lo_ref[0], hi_ref[0]], axis=1)                 # (TL, 256)

    # One MXU pass computes real and imag projections together.
    acc = jnp.dot(frames, w_ref[...], preferred_element_type=jnp.float32)    # (TL, 2*cpad)
    real = acc[:, :cpad]
    imag = acc[:, cpad:]
    mag = jnp.sqrt(real * real + imag * imag)                                # (TL, cpad)

    # Transpose on-chip (XLU) so the HBM write is already (channel, time).
    mag_t = mag.T                                                            # (cpad, TL)
    out_ref[0] = mag_t[:cutoff, :]                                           # (cutoff, TL)


def make_forward_basis(n_fft=N_FFT):
    """Deterministic Fourier basis matching forward_basis_buffer shape (n_fft+2, 1, n_fft)."""
    k = jnp.arange(n_fft // 2 + 1, dtype=jnp.float32)[:, None]
    n = jnp.arange(n_fft, dtype=jnp.float32)[None, :]
    ang = 2.0 * math.pi * k * n / float(n_fft)
    real = jnp.cos(ang)
    imag = -jnp.sin(ang)
    basis = jnp.concatenate([real, imag], axis=0)                 # (n_fft+2, n_fft)
    return basis.reshape(n_fft + 2, 1, n_fft).astype(jnp.float32)


@jax.jit
def stft_conv2_forward(x, forward_basis):
    """x: (B, T) float32, forward_basis: (n_fft+2, 1, n_fft). Returns (B, 129, L)."""
    B, T = x.shape
    n_fft = forward_basis.shape[2]
    cutoff = n_fft // 2 + 1
    cpad = _round_up(cutoff, 128)                                 # 129 -> 256
    assert T > TO_PAD, "reflect padding of width 64 requires T > 64"

    # --- glue: reflect pad + contiguous 128-sample chunking (no gather) ---
    x_pad = jnp.pad(x, ((0, 0), (0, TO_PAD)), mode="reflect")     # (B, T+64)
    L = (T + TO_PAD - n_fft) // STRIDE + 1
    chunks = x_pad[:, :(L + 1) * STRIDE].reshape(B, L + 1, STRIDE)  # (B, L+1, 128)

    # Tile size over frames: big lane-dense tiles, or the whole (padded) L if small.
    if L <= TL_TARGET:
        TL = _round_up(L, 8)
        Lpad = TL
    else:
        TL = TL_TARGET
        Lpad = _round_up(L, TL)

    chunks = jnp.pad(chunks, ((0, 0), (0, Lpad + 1 - (L + 1)), (0, 0)))
    lo = chunks[:, :Lpad, :]            # frame l, samples [0,128)
    hi = chunks[:, 1:Lpad + 1, :]       # frame l, samples [128,256)

    # --- glue: fused [real | imag] weight matrix, each half lane-padded to cpad ---
    w = forward_basis[:, 0, :]                                    # (n_fft+2, n_fft)
    wr = jnp.pad(w[:cutoff, :].T, ((0, 0), (0, cpad - cutoff)))   # (n_fft, cpad)
    wi = jnp.pad(w[cutoff:, :].T, ((0, 0), (0, cpad - cutoff)))   # (n_fft, cpad)
    w_cat = jnp.concatenate([wr, wi], axis=1)                     # (n_fft, 2*cpad)

    out = pl.pallas_call(
        stft_mag_kernel,
        out_shape=jax.ShapeDtypeStruct((B, cutoff, Lpad), jnp.float32),
        grid_spec=pltpu.PrefetchScalarGridSpec(
            num_scalar_prefetch=0,
            grid=(B, Lpad // TL),
            in_specs=[
                pl.BlockSpec((1, TL, STRIDE), lambda b, lt: (b, lt, 0)),
                pl.BlockSpec((1, TL, STRIDE), lambda b, lt: (b, lt, 0)),
                pl.BlockSpec((n_fft, 2 * cpad), lambda b, lt: (0, 0)),
            ],
            out_specs=pl.BlockSpec((1, cutoff, TL), lambda b, lt: (b, 0, lt)),
        ),
        compiler_params=pltpu.CompilerParams(
            dimension_semantics=("parallel", "parallel"),
        ),
    )(lo, hi, w_cat)

    # Only a last-dim unpad remains (no reshape/transpose pass).
    return out[:, :, :L] if Lpad != L else out


def stft_conv2_reference(x, forward_basis):
    """Pure-JAX reference mirroring the PyTorch forward (for correctness check)."""
    B, T = x.shape
    n_fft = forward_basis.shape[2]
    cutoff = n_fft // 2 + 1
    x_pad = jnp.pad(x, ((0, 0), (0, TO_PAD)), mode="reflect")
    L = (T + TO_PAD - n_fft) // STRIDE + 1
    idx = jnp.arange(L)[:, None] * STRIDE + jnp.arange(n_fft)[None, :]
    frames = x_pad[:, idx]                                        # (B, L, n_fft)
    w = forward_basis[:, 0, :]                                    # (n_fft+2, n_fft)
    out = jnp.einsum("bln,cn->bcl", frames, w)                    # (B, n_fft+2, L)
    real, imag = out[:, :cutoff, :], out[:, cutoff:, :]
    return jnp.sqrt(real * real + imag * imag)


if __name__ == "__main__":
    key = jax.random.PRNGKey(0)
    B, T = 2, 512                                # L = (512+64-256)//128+1 = 3
    x = jax.random.normal(key, (B, T), dtype=jnp.float32)
    basis = make_forward_basis(N_FFT)

    mag = stft_conv2_forward(x, basis)
    mag = jax.block_until_ready(mag)

    ref = stft_conv2_reference(x, basis)
    L = (T + TO_PAD - N_FFT) // STRIDE + 1
    assert mag.shape == (B, CUTOFF, L), mag.shape
    assert jnp.allclose(mag, ref, rtol=1e-4, atol=1e-3), float(jnp.max(jnp.abs(mag - ref)))

    print("KERNEL_OK")
</pallas_src>

<mosaic_0001>
module attributes {stable_mosaic.version = 11 : i64} {
  func.func @stft_mag_kernel(%arg0: i32, %arg1: i32, %arg2: memref<1x8x128xf32, #tpu.memory_space<vmem>>, %arg3: memref<1x8x128xf32, #tpu.memory_space<vmem>>, %arg4: memref<256x512xf32, #tpu.memory_space<vmem>>, %arg5: memref<1x129x8xf32, #tpu.memory_space<vmem>>) attributes {dimension_semantics = [#tpu.dimension_semantics<parallel>, #tpu.dimension_semantics<parallel>], iteration_bounds = array<i64: 2, 1>, scalar_prefetch = 0 : i64, scratch_operands = 0 : i64, tpu.core_type = #tpu.core_type<tc>, window_params = [{transform_indices = @transform_0, window_bounds = array<i64: 1, 8, 128>}, {transform_indices = @transform_1, window_bounds = array<i64: 1, 8, 128>}, {pipeline_mode = #tpu.pipeline_mode<synchronous>, transform_indices = @transform_2, window_bounds = array<i64: 256, 512>}, {transform_indices = @transform_3, window_bounds = array<i64: 1, 129, 8>}]} {
    %c0 = arith.constant 0 : index
    %c0_0 = arith.constant 0 : index
    %c0_1 = arith.constant 0 : index
    %0 = vector.load %arg2[%c0, %c0_0, %c0_1] : memref<1x8x128xf32, #tpu.memory_space<vmem>>, vector<1x8x128xf32>
    %1 = vector.shape_cast %0 : vector<1x8x128xf32> to vector<8x128xf32>
    %c0_2 = arith.constant 0 : index
    %c0_3 = arith.constant 0 : index
    %c0_4 = arith.constant 0 : index
    %2 = vector.load %arg3[%c0_2, %c0_3, %c0_4] : memref<1x8x128xf32, #tpu.memory_space<vmem>>, vector<1x8x128xf32>
    %3 = vector.shape_cast %2 : vector<1x8x128xf32> to vector<8x128xf32>
    %4 = tpu.concatenate %1, %3 in 1 : vector<8x128xf32>, vector<8x128xf32> -> vector<8x256xf32>
    %c0_5 = arith.constant 0 : index
    %c0_6 = arith.constant 0 : index
    %5 = vector.load %arg4[%c0_5, %c0_6] : memref<256x512xf32, #tpu.memory_space<vmem>>, vector<256x512xf32>
    %cst = arith.constant dense<0.000000e+00> : vector<8x512xf32>
    %6 = tpu.matmul %4, %5, %cst {dimension_numbers = #tpu.dot_dimension_numbers<[1], [0], [0], [1], [0, 0, 1, 1], [], []>} : vector<8x256xf32>, vector<256x512xf32>, vector<8x512xf32> -> vector<8x512xf32>
    %7 = vector.extract_strided_slice %6 {offsets = [0, 0], sizes = [8, 256], strides = [1, 1]} : vector<8x512xf32> to vector<8x256xf32>
    %8 = vector.extract_strided_slice %6 {offsets = [0, 256], sizes = [8, 256], strides = [1, 1]} : vector<8x512xf32> to vector<8x256xf32>
    %9 = arith.mulf %7, %7 : vector<8x256xf32>
    %10 = arith.mulf %8, %8 : vector<8x256xf32>
    %11 = arith.addf %9, %10 : vector<8x256xf32>
    %12 = math.sqrt %11 : vector<8x256xf32>
    %13 = tpu.transpose %12, [1, 0] : vector<8x256xf32> -> vector<256x8xf32>
    %14 = vector.extract_strided_slice %13 {offsets = [0, 0], sizes = [129, 8], strides = [1, 1]} : vector<256x8xf32> to vector<129x8xf32>
    %c0_7 = arith.constant 0 : index
    %c0_8 = arith.constant 0 : index
    %c0_9 = arith.constant 0 : index
    %15 = vector.load %arg5[%c0_7, %c0_8, %c0_9] : memref<1x129x8xf32, #tpu.memory_space<vmem>>, vector<1x129x8xf32>
    %16 = vector.shape_cast %15 : vector<1x129x8xf32> to vector<129x8xf32>
    %17 = vector.shape_cast %14 : vector<129x8xf32> to vector<1x129x8xf32>
    tpu.vector_store %arg5[%c0_7, %c0_8, %c0_9], %17 {strides = array<i32>} : memref<1x129x8xf32, #tpu.memory_space<vmem>>, vector<1x129x8xf32>,
    return
  }
  func.func @transform_0(%arg0: i32, %arg1: i32) -> (i32, i32, i32) {
    %c0_i32 = arith.constant 0 : i32
    %c0_i32_0 = arith.constant 0 : i32
    return %arg0, %arg1, %c0_i32 : i32, i32, i32
  }
  func.func @transform_1(%arg0: i32, %arg1: i32) -> (i32, i32, i32) {
    %c0_i32 = arith.constant 0 : i32
    %c0_i32_0 = arith.constant 0 : i32
    return %arg0, %arg1, %c0_i32 : i32, i32, i32
  }
  func.func @transform_2(%arg0: i32, %arg1: i32) -> (i32, i32) {
    %c0_i32 = arith.constant 0 : i32
    %c0_i32_0 = arith.constant 0 : i32
    %c0_i32_1 = arith.constant 0 : i32
    return %c0_i32, %c0_i32_0 : i32, i32
  }
  func.func @transform_3(%arg0: i32, %arg1: i32) -> (i32, i32, i32) {
    %c0_i32 = arith.constant 0 : i32
    %c0_i32_0 = arith.constant 0 : i32
    return %arg0, %c0_i32, %arg1 : i32, i32, i32
  }
}

</mosaic_0001>

<bundles_post_ra>
// kernel: stft_conv2_forward.1
= control target key start
LH: loop header
LB: loop body
LE: loop exit
PB: predicated region body
PF: predicated region fallthrough
CT: control target
= control target key end

     0   :  { %s909_s12 = smov 0   ;;  %s911_s13 = smov 0   ;;  %s1378_s0 = inlined_call_operand.vmem [shape: f32[2,8,128], index: 0, kind: input, shape index: {}]   ;;  %s1379_s1 = inlined_call_operand.vmem [shape: f32[2,8,128], index: 1, kind: input, shape index: {}]   ;;  %s1380_s2 = inlined_call_operand.vmem [shape: f32[256,512], index: 2, kind: input, shape index: {}]   ;;  %s1381_s3 = inlined_call_operand.vmem [shape: f32[2,129,8], index: 3, kind: output, shape index: {}]  }
   0x1   :  { %s913_s14 = smov 0  }
   0x2 LB: > { %s25_s15 = sadd.s32 1, %s883_s13  ;;  %p701_p0 = scmp.ge.s32.totalorder %s887_s14, 1  ;;  %s887_s14 = sphi %s913_s14, %s13_s14   ;;  %s883_s13 = sphi %s911_s13, %s1383_s13   ;;  %s879_s12 = sphi %s909_s12, %s1382_s12  }
   0x3   : > { %p27_p1 = scmp.ge.s32.totalorder %s25_s15, 2  ;;  %p169_p2 = scmp.lt.s32.totalorder %s887_s14, 3 }
   0x5   : > { %s1385_s15 = smov (%p27_p1, %s25_s15), 0  ;;  %p170_p3 = pnand %p701_p0, %p169_p2 }
   0x6   : > { %v230_v0 = vld [vmem:[%s1380_s2 + $0x8] sm:$0xff] (!%p170_p3)  ;;  %v232_v2 = vld [vmem:[%s1380_s2 + $0x18] sm:$0xff] (!%p170_p3)  ;;  %v229_v5 = vld [vmem:[%s1380_s2] sm:$0xff] (!%p170_p3)  ;;  %p205_p4 = scmp.lt.s32.totalorder (!%p170_p3), %s879_s12, 1  ;;  %vm583_vm4 = vcmask (!%p170_p3), 64512   ;;  %vm600_vm5 = vcmask (!%p170_p3), 57344  }
   0x7   : > { %173 = sbr.rel (%p170_p3) target bundleno = 500 (0x1f4), region = 32  ;;  %v234_v1 = vld [vmem:[%s1380_s2 + $0x28] sm:$0xff] (!%p170_p3)  ;;  %v236_v4 = vld [vmem:[%s1380_s2 + $0x38] sm:$0xff] (!%p170_p3)  ;;  %v233_v6 = vld [vmem:[%s1380_s2 + $0x20] sm:$0xff] (!%p170_p3) }
   0x8   : > { %v707_v3 = vpack.c.bf16 (!%p170_p3), %v234_v1, %v230_v0  ;;  %v771_v7 = vpack.c.bf16 (!%p170_p3), %v236_v4, %v232_v2  ;;  %v709_v8 = vpack.c.bf16 (!%p170_p3), %v233_v6, %v229_v5  ;;  %v231_v9 = vld [vmem:[%s1380_s2 + $0x10] sm:$0xff] (!%p170_p3)  ;;  %v238_v11 = vld [vmem:[%s1380_s2 + $0x48] sm:$0xff] (!%p170_p3)  ;;  %v240_v14 = vld [vmem:[%s1380_s2 + $0x58] sm:$0xff] (!%p170_p3) }
   0x9   : > { %v235_v10 = vld [vmem:[%s1380_s2 + $0x30] sm:$0xff] (!%p170_p3)  ;;  %v242_v13 = vld [vmem:[%s1380_s2 + $0x68] sm:$0xff] (!%p170_p3)  ;;  %v244_v15 = vld [vmem:[%s1380_s2 + $0x78] sm:$0xff] (!%p170_p3) }
   0xa   : > { %708 = vmatprep.subr.bf16.mxu0 (!%p170_p3), %v707_v3  ;;  %v773_v12 = vpack.c.bf16 (!%p170_p3), %v235_v10, %v231_v9  ;;  %772 = vmatprep.subr.bf16.mxu1 (!%p170_p3), %v771_v7  ;;  %v711_v16 = vpack.c.bf16 (!%p170_p3), %v242_v13, %v238_v11  ;;  %v775_v17 = vpack.c.bf16 (!%p170_p3), %v244_v15, %v240_v14  ;;  %v237_v18 = vld [vmem:[%s1380_s2 + $0x40] sm:$0xff] (!%p170_p3)  ;;  %v239_v20 = vld [vmem:[%s1380_s2 + $0x50] sm:$0xff] (!%p170_p3)  ;;  %v246_v23 = vld [vmem:[%s1380_s2 + $0x88] sm:$0xff] (!%p170_p3) }
   0xb   : > { %710 = vmatpush1.bf16.msra.mxu0 (!%p170_p3), %v709_v8  ;;  %v241_v19 = vld [vmem:[%s1380_s2 + $0x60] sm:$0xff] (!%p170_p3)  ;;  %v243_v22 = vld [vmem:[%s1380_s2 + $0x70] sm:$0xff] (!%p170_p3)  ;;  %v250_v24 = vld [vmem:[%s1380_s2 + $0xa8] sm:$0xff] (!%p170_p3) }
   0xc   : > { %774 = vmatpush1.bf16.msra.mxu1 (!%p170_p3), %v773_v12  ;;  %v713_v21 = vpack.c.bf16 (!%p170_p3), %v241_v19, %v237_v18  ;;  %712 = vmatprep.subr.bf16.mxu0 (!%p170_p3), %v711_v16  ;;  %v777_v25 = vpack.c.bf16 (!%p170_p3), %v243_v22, %v239_v20  ;;  %v715_v26 = vpack.c.bf16 (!%p170_p3), %v250_v24, %v246_v23  ;;  %v248_v27 = vld [vmem:[%s1380_s2 + $0x98] sm:$0xff] (!%p170_p3)  ;;  %v245_v29 = vld [vmem:[%s1380_s2 + $0x80] sm:$0xff] (!%p170_p3)  ;;  %v247_v32 = vld [vmem:[%s1380_s2 + $0x90] sm:$0xff] (!%p170_p3) }
   0xd   : > { %776 = vmatprep.subr.bf16.mxu1 (!%p170_p3), %v775_v17  ;;  %v252_v28 = vld [vmem:[%s1380_s2 + $0xb8] sm:$0xff] (!%p170_p3)  ;;  %v249_v31 = vld [vmem:[%s1380_s2 + $0xa0] sm:$0xff] (!%p170_p3)  ;;  %v251_v33 = vld [vmem:[%s1380_s2 + $0xb0] sm:$0xff] (!%p170_p3) }
   0xe   : > { %v779_v30 = vpack.c.bf16 %v252_v28, %v248_v27  ;;  %v717_v34 = vpack.c.bf16 %v249_v31, %v245_v29  ;;  %v254_v35 = vld [vmem:[%s1380_s2 + $0xc8] sm:$0xff]  ;;  %v256_v37 = vld [vmem:[%s1380_s2 + $0xd8] sm:$0xff]  ;;  %v781_v38 = vpack.c.bf16 %v251_v33, %v247_v32  ;;  %v253_v41 = vld [vmem:[%s1380_s2 + $0xc0] sm:$0xff]  ;;  %s1387_s12 = smov (!%p205_p4, %s879_s12), 1 }
   0xf   : > { %714 = vmatpush1.bf16.msra.mxu0 %v713_v21  ;;  %v258_v36 = vld [vmem:[%s1380_s2 + $0xe8] sm:$0xff]  ;;  %v260_v40 = vld [vmem:[%s1380_s2 + $0xf8] sm:$0xff]  ;;  %v257_v42 = vld [vmem:[%s1380_s2 + $0xe0] sm:$0xff]  ;;  %s702_s23 = sshll.u32 %s1387_s12, 3 }
  0x10   : > { %778 = vmatpush1.bf16.msra.mxu1 %v777_v25  ;;  %716 = vmatprep.subr.bf16.mxu0 %v715_v26  ;;  %v719_v39 = vpack.c.bf16 %v258_v36, %v254_v35  ;;  %v783_v43 = vpack.c.bf16 %v260_v40, %v256_v37  ;;  %v255_v44 = vld [vmem:[%s1380_s2 + $0xd0] sm:$0xff]  ;;  %v262_v46 = vld [vmem:[%s1380_s2 + $0x108] sm:$0xff]  ;;  %v264_v48 = vld [vmem:[%s1380_s2 + $0x118] sm:$0xff]  ;;  %v721_v50 = vpack.c.bf16 %v257_v42, %v253_v41  ;;  %s218_s19 = scalar_lea.vmem %s1379_s1, %s702_s23  ;;  %s211_s29 = scalar_lea.vmem %s1378_s0, %s702_s23 }
  0x11   : > { %780 = vmatprep.subr.bf16.mxu1 %v779_v30  ;;  %v259_v45 = vld [vmem:[%s1380_s2 + $0xf0] sm:$0xff]  ;;  %v266_v47 = vld [vmem:[%s1380_s2 + $0x128] sm:$0xff]  ;;  %v268_v49 = vld [vmem:[%s1380_s2 + $0x138] sm:$0xff]  ;;  %s835_s23 = smul.u32 136, %s1387_s12 }
  0x12   : > { %v785_v51 = vpack.c.bf16 %v259_v45, %v255_v44  ;;  %v723_v52 = vpack.c.bf16 %v266_v47, %v262_v46  ;;  %v261_v53 = vld [vmem:[%s1380_s2 + $0x100] sm:$0xff]  ;;  %v263_v55 = vld [vmem:[%s1380_s2 + $0x110] sm:$0xff]  ;;  %v787_v56 = vpack.c.bf16 %v268_v49, %v264_v48  ;;  %v270_v58 = vld [vmem:[%s1380_s2 + $0x148] sm:$0xff] }
  0x13   : > { %718 = vmatpush1.bf16.msra.mxu0 %v717_v34  ;;  %v265_v54 = vld [vmem:[%s1380_s2 + $0x120] sm:$0xff]  ;;  %v267_v57 = vld [vmem:[%s1380_s2 + $0x130] sm:$0xff]  ;;  %v274_v59 = vld [vmem:[%s1380_s2 + $0x168] sm:$0xff]  ;;  %s1334_s5 = scalar_lea.vmem %s1381_s3, %s835_s23 }
  0x14   : > { %782 = vmatpush1.bf16.msra.mxu1 %v781_v38  ;;  %720 = vmatprep.subr.bf16.mxu0 %v719_v39  ;;  %v272_v60 = vld [vmem:[%s1380_s2 + $0x158] sm:$0xff]  ;;  %v725_v62 = vpack.c.bf16 %v265_v54, %v261_v53  ;;  %v789_v63 = vpack.c.bf16 %v267_v57, %v263_v55  ;;  %v727_v0 = vpack.c.bf16 %v274_v59, %v270_v58  ;;  %v269_v1 = vld [vmem:[%s1380_s2 + $0x140] sm:$0xff]  ;;  %v271_v3 = vld [vmem:[%s1380_s2 + $0x150] sm:$0xff] }
  0x15   : > { %784 = vmatprep.subr.bf16.mxu1 %v783_v43  ;;  %v276_v61 = vld [vmem:[%s1380_s2 + $0x178] sm:$0xff]  ;;  %v273_v2 = vld [vmem:[%s1380_s2 + $0x160] sm:$0xff]  ;;  %v275_v5 = vld [vmem:[%s1380_s2 + $0x170] sm:$0xff] }
  0x16   : > { %v791_v4 = vpack.c.bf16 %v276_v61, %v272_v60  ;;  %v278_v6 = vld [vmem:[%s1380_s2 + $0x188] sm:$0xff]  ;;  %v280_v8 = vld [vmem:[%s1380_s2 + $0x198] sm:$0xff]  ;;  %v729_v10 = vpack.c.bf16 %v273_v2, %v269_v1  ;;  %v793_v11 = vpack.c.bf16 %v275_v5, %v271_v3  ;;  %v277_v13 = vld [vmem:[%s1380_s2 + $0x180] sm:$0xff] }
  0x17   : > { %722 = vmatpush1.bf16.msra.mxu0 %v721_v50  ;;  %v282_v7 = vld [vmem:[%s1380_s2 + $0x1a8] sm:$0xff]  ;;  %v284_v9 = vld [vmem:[%s1380_s2 + $0x1b8] sm:$0xff]  ;;  %v281_v14 = vld [vmem:[%s1380_s2 + $0x1a0] sm:$0xff] }
  0x18   : > { %786 = vmatpush1.bf16.msra.mxu1 %v785_v51  ;;  %724 = vmatprep.subr.bf16.mxu0 %v723_v52  ;;  %v731_v12 = vpack.c.bf16 %v282_v7, %v278_v6  ;;  %v279_v15 = vld [vmem:[%s1380_s2 + $0x190] sm:$0xff]  ;;  %v795_v16 = vpack.c.bf16 %v284_v9, %v280_v8  ;;  %v286_v18 = vld [vmem:[%s1380_s2 + $0x1c8] sm:$0xff]  ;;  %v288_v20 = vld [vmem:[%s1380_s2 + $0x1d8] sm:$0xff]  ;;  %v733_v22 = vpack.c.bf16 %v281_v14, %v277_v13 }
  0x19   : > { %788 = vmatprep.subr.bf16.mxu1 %v787_v56  ;;  %v283_v17 = vld [vmem:[%s1380_s2 + $0x1b0] sm:$0xff]  ;;  %v290_v19 = vld [vmem:[%s1380_s2 + $0x1e8] sm:$0xff]  ;;  %v292_v21 = vld [vmem:[%s1380_s2 + $0x1f8] sm:$0xff] }
  0x1a   : > { %v797_v23 = vpack.c.bf16 %v283_v17, %v279_v15  ;;  %v735_v24 = vpack.c.bf16 %v290_v19, %v286_v18  ;;  %v285_v25 = vld [vmem:[%s1380_s2 + $0x1c0] sm:$0xff]  ;;  %v287_v27 = vld [vmem:[%s1380_s2 + $0x1d0] sm:$0xff]  ;;  %v799_v28 = vpack.c.bf16 %v292_v21, %v288_v20  ;;  %v294_v30 = vld [vmem:[%s1380_s2 + $0x208] sm:$0xff] }
  0x1b   : > { %726 = vmatpush1.bf16.msra.mxu0 %v725_v62  ;;  %v289_v26 = vld [vmem:[%s1380_s2 + $0x1e0] sm:$0xff]  ;;  %v291_v29 = vld [vmem:[%s1380_s2 + $0x1f0] sm:$0xff]  ;;  %v298_v31 = vld [vmem:[%s1380_s2 + $0x228] sm:$0xff] }
  0x1c   : > { %790 = vmatpush1.bf16.msra.mxu1 %v789_v63  ;;  %728 = vmatprep.subr.bf16.mxu0 %v727_v0  ;;  %v296_v32 = vld [vmem:[%s1380_s2 + $0x218] sm:$0xff]  ;;  %v737_v34 = vpack.c.bf16 %v289_v26, %v285_v25  ;;  %v801_v35 = vpack.c.bf16 %v291_v29, %v287_v27  ;;  %v739_v36 = vpack.c.bf16 %v298_v31, %v294_v30  ;;  %v293_v37 = vld [vmem:[%s1380_s2 + $0x200] sm:$0xff]  ;;  %v295_v39 = vld [vmem:[%s1380_s2 + $0x210] sm:$0xff] }
  0x1d   : > { %792 = vmatprep.subr.bf16.mxu1 %v791_v4  ;;  %v300_v33 = vld [vmem:[%s1380_s2 + $0x238] sm:$0xff]  ;;  %v297_v38 = vld [vmem:[%s1380_s2 + $0x220] sm:$0xff]  ;;  %v299_v41 = vld [vmem:[%s1380_s2 + $0x230] sm:$0xff] }
  0x1e   : > { %v803_v40 = vpack.c.bf16 %v300_v33, %v296_v32  ;;  %v302_v42 = vld [vmem:[%s1380_s2 + $0x248] sm:$0xff]  ;;  %v304_v44 = vld [vmem:[%s1380_s2 + $0x258] sm:$0xff]  ;;  %v741_v46 = vpack.c.bf16 %v297_v38, %v293_v37  ;;  %v805_v47 = vpack.c.bf16 %v299_v41, %v295_v39  ;;  %v301_v49 = vld [vmem:[%s1380_s2 + $0x240] sm:$0xff] }
  0x1f   : > { %730 = vmatpush1.bf16.msra.mxu0 %v729_v10  ;;  %v306_v43 = vld [vmem:[%s1380_s2 + $0x268] sm:$0xff]  ;;  %v308_v45 = vld [vmem:[%s1380_s2 + $0x278] sm:$0xff]  ;;  %v305_v50 = vld [vmem:[%s1380_s2 + $0x260] sm:$0xff] }
  0x20   : > { %794 = vmatpush1.bf16.msra.mxu1 %v793_v11  ;;  %732 = vmatprep.subr.bf16.mxu0 %v731_v12  ;;  %v743_v48 = vpack.c.bf16 %v306_v43, %v302_v42  ;;  %v303_v51 = vld [vmem:[%s1380_s2 + $0x250] sm:$0xff]  ;;  %v807_v52 = vpack.c.bf16 %v308_v45, %v304_v44  ;;  %v310_v54 = vld [vmem:[%s1380_s2 + $0x288] sm:$0xff]  ;;  %v312_v56 = vld [vmem:[%s1380_s2 + $0x298] sm:$0xff]  ;;  %v745_v58 = vpack.c.bf16 %v305_v50, %v301_v49 }
  0x21   : > { %796 = vmatprep.subr.bf16.mxu1 %v795_v16  ;;  %v307_v53 = vld [vmem:[%s1380_s2 + $0x270] sm:$0xff]  ;;  %v314_v55 = vld [vmem:[%s1380_s2 + $0x2a8] sm:$0xff]  ;;  %v316_v57 = vld [vmem:[%s1380_s2 + $0x2b8] sm:$0xff] }
  0x22   : > { %v809_v59 = vpack.c.bf16 %v307_v53, %v303_v51  ;;  %v747_v60 = vpack.c.bf16 %v314_v55, %v310_v54  ;;  %v309_v61 = vld [vmem:[%s1380_s2 + $0x280] sm:$0xff]  ;;  %v311_v63 = vld [vmem:[%s1380_s2 + $0x290] sm:$0xff]  ;;  %v811_v0 = vpack.c.bf16 %v316_v57, %v312_v56  ;;  %v318_v2 = vld [vmem:[%s1380_s2 + $0x2c8] sm:$0xff] }
  0x23   : > { %734 = vmatpush1.bf16.msra.mxu0 %v733_v22  ;;  %v313_v62 = vld [vmem:[%s1380_s2 + $0x2a0] sm:$0xff]  ;;  %v315_v1 = vld [vmem:[%s1380_s2 + $0x2b0] sm:$0xff]  ;;  %v322_v3 = vld [vmem:[%s1380_s2 + $0x2e8] sm:$0xff] }
  0x24   : > { %798 = vmatpush1.bf16.msra.mxu1 %v797_v23  ;;  %736 = vmatprep.subr.bf16.mxu0 %v735_v24  ;;  %v320_v4 = vld [vmem:[%s1380_s2 + $0x2d8] sm:$0xff]  ;;  %v749_v6 = vpack.c.bf16 %v313_v62, %v309_v61  ;;  %v317_v7 = vld [vmem:[%s1380_s2 + $0x2c0] sm:$0xff]  ;;  %v813_v8 = vpack.c.bf16 %v315_v1, %v311_v63  ;;  %v751_v9 = vpack.c.bf16 %v322_v3, %v318_v2  ;;  %v319_v11 = vld [vmem:[%s1380_s2 + $0x2d0] sm:$0xff] }
  0x25   : > { %800 = vmatprep.subr.bf16.mxu1 %v799_v28  ;;  %v324_v5 = vld [vmem:[%s1380_s2 + $0x2f8] sm:$0xff]  ;;  %v321_v10 = vld [vmem:[%s1380_s2 + $0x2e0] sm:$0xff]  ;;  %v323_v12 = vld [vmem:[%s1380_s2 + $0x2f0] sm:$0xff] }
  0x26   : > { %v815_v13 = vpack.c.bf16 %v324_v5, %v320_v4  ;;  %v326_v14 = vld [vmem:[%s1380_s2 + $0x308] sm:$0xff]  ;;  %v228_v16 = vld [vmem:[%s218_s19] sm:$0xff]  ;;  %v328_v17 = vld [vmem:[%s1380_s2 + $0x318] sm:$0xff]  ;;  %v753_v19 = vpack.c.bf16 %v321_v10, %v317_v7  ;;  %v817_v20 = vpack.c.bf16 %v323_v12, %v319_v11 }
  0x27   : > { %738 = vmatpush1.bf16.msra.mxu0 %v737_v34  ;;  %v330_v15 = vld [vmem:[%s1380_s2 + $0x328] sm:$0xff]  ;;  %v332_v18 = vld [vmem:[%s1380_s2 + $0x338] sm:$0xff]  ;;  %421 = vmatprep.mubr.f32.mxu0 %v228_v16  ;;  %v325_v22 = vld [vmem:[%s1380_s2 + $0x300] sm:$0xff] }
  0x28   : > { %802 = vmatpush1.bf16.msra.mxu1 %v801_v35  ;;  %740 = vmatprep.subr.bf16.mxu0 %v739_v36  ;;  %v755_v21 = vpack.c.bf16 %v330_v15, %v326_v14  ;;  %v329_v23 = vld [vmem:[%s1380_s2 + $0x320] sm:$0xff]  ;;  %v327_v24 = vld [vmem:[%s1380_s2 + $0x310] sm:$0xff]  ;;  %v819_v25 = vpack.c.bf16 %v332_v18, %v328_v17  ;;  %v334_v27 = vld [vmem:[%s1380_s2 + $0x348] sm:$0xff] }
  0x29   : > { %804 = vmatprep.subr.bf16.mxu1 %v803_v40  ;;  %492 = vmatprep.mubr.f32.mxu1 %v228_v16  ;;  %v331_v26 = vld [vmem:[%s1380_s2 + $0x330] sm:$0xff]  ;;  %v338_v28 = vld [vmem:[%s1380_s2 + $0x368] sm:$0xff]  ;;  %v336_v29 = vld [vmem:[%s1380_s2 + $0x358] sm:$0xff]  ;;  %v757_v31 = vpack.c.bf16 %v329_v23, %v325_v22 }
  0x2a   : > { %v340_v30 = vld [vmem:[%s1380_s2 + $0x378] sm:$0xff]  ;;  %v821_v32 = vpack.c.bf16 %v331_v26, %v327_v24  ;;  %v759_v33 = vpack.c.bf16 %v338_v28, %v334_v27  ;;  %v333_v34 = vld [vmem:[%s1380_s2 + $0x340] sm:$0xff]  ;;  %v335_v36 = vld [vmem:[%s1380_s2 + $0x350] sm:$0xff] }
  0x2b   : > { %742 = vmatpush1.bf16.msra.mxu0 %v741_v46  ;;  %v337_v35 = vld [vmem:[%s1380_s2 + $0x360] sm:$0xff]  ;;  %v823_v37 = vpack.c.bf16 %v340_v30, %v336_v29  ;;  %v339_v38 = vld [vmem:[%s1380_s2 + $0x370] sm:$0xff]  ;;  %v342_v39 = vld [vmem:[%s1380_s2 + $0x388] sm:$0xff] }
  0x2c   : > { %806 = vmatpush1.bf16.msra.mxu1 %v805_v47  ;;  %744 = vmatprep.subr.bf16.mxu0 %v743_v48  ;;  %v346_v40 = vld [vmem:[%s1380_s2 + $0x3a8] sm:$0xff]  ;;  %v344_v41 = vld [vmem:[%s1380_s2 + $0x398] sm:$0xff]  ;;  %v761_v43 = vpack.c.bf16 %v337_v35, %v333_v34  ;;  %v825_v44 = vpack.c.bf16 %v339_v38, %v335_v36  ;;  %v341_v46 = vld [vmem:[%s1380_s2 + $0x380] sm:$0xff] }
  0x2d   : > { %808 = vmatprep.subr.bf16.mxu1 %v807_v52  ;;  %v348_v42 = vld [vmem:[%s1380_s2 + $0x3b8] sm:$0xff]  ;;  %v763_v45 = vpack.c.bf16 %v346_v40, %v342_v39  ;;  %v345_v47 = vld [vmem:[%s1380_s2 + $0x3a0] sm:$0xff]  ;;  %v343_v48 = vld [vmem:[%s1380_s2 + $0x390] sm:$0xff] }
  0x2e   : > { %v827_v49 = vpack.c.bf16 %v348_v42, %v344_v41  ;;  %v347_v50 = vld [vmem:[%s1380_s2 + $0x3b0] sm:$0xff]  ;;  %v350_v51 = vld [vmem:[%s1380_s2 + $0x3c8] sm:$0xff]  ;;  %v352_v53 = vld [vmem:[%s1380_s2 + $0x3d8] sm:$0xff]  ;;  %v765_v55 = vpack.c.bf16 %v345_v47, %v341_v46 }
  0x2f   : > { %746 = vmatpush1.bf16.msra.mxu0 %v745_v58  ;;  %v354_v52 = vld [vmem:[%s1380_s2 + $0x3e8] sm:$0xff]  ;;  %v356_v54 = vld [vmem:[%s1380_s2 + $0x3f8] sm:$0xff]  ;;  %v829_v56 = vpack.c.bf16 %v347_v50, %v343_v48  ;;  %v349_v58 = vld [vmem:[%s1380_s2 + $0x3c0] sm:$0xff] }
  0x30   : > { %810 = vmatpush1.bf16.msra.mxu1 %v809_v59  ;;  %748 = vmatprep.subr.bf16.mxu0 %v747_v60  ;;  %v767_v57 = vpack.c.bf16 %v354_v52, %v350_v51  ;;  %v353_v59 = vld [vmem:[%s1380_s2 + $0x3e0] sm:$0xff]  ;;  %v831_v60 = vpack.c.bf16 %v356_v54, %v352_v53  ;;  %v351_v61 = vld [vmem:[%s1380_s2 + $0x3d0] sm:$0xff] }
  0x31   : > { %812 = vmatprep.subr.bf16.mxu1 %v811_v0  ;;  %v355_v62 = vld [vmem:[%s1380_s2 + $0x3f0] sm:$0xff]  ;;  %v769_v63 = vpack.c.bf16 %v353_v59, %v349_v58  ;;  %v227_v1 = vld [vmem:[%s211_s29] sm:$0xff] }
  0x32   : > { %v833_v0 = vpack.c.bf16 %v355_v62, %v351_v61 }
  0x33   : > { %750 = vmatpush1.bf16.msra.mxu0 %v749_v6 }
  0x34   : > { %814 = vmatpush1.bf16.msra.mxu1 %v813_v8  ;;  %752 = vmatprep.subr.bf16.mxu0 %v751_v9 }
  0x35   : > { %816 = vmatprep.subr.bf16.mxu1 %v815_v13 }
  0x37   : > { %754 = vmatpush1.bf16.msra.mxu0 %v753_v19 }
  0x38   : > { %818 = vmatpush1.bf16.msra.mxu1 %v817_v20  ;;  %756 = vmatprep.subr.bf16.mxu0 %v755_v21 }
  0x39   : > { %820 = vmatprep.subr.bf16.mxu1 %v819_v25 }
  0x3b   : > { %758 = vmatpush1.bf16.msra.mxu0 %v757_v31 }
  0x3c   : > { %822 = vmatpush1.bf16.msra.mxu1 %v821_v32  ;;  %760 = vmatprep.subr.bf16.mxu0 %v759_v33 }
  0x3d   : > { %824 = vmatprep.subr.bf16.mxu1 %v823_v37 }
  0x3f   : > { %762 = vmatpush1.bf16.msra.mxu0 %v761_v43 }
  0x40   : > { %826 = vmatpush1.bf16.msra.mxu1 %v825_v44  ;;  %764 = vmatprep.subr.bf16.mxu0 %v763_v45 }
  0x41   : > { %828 = vmatprep.subr.bf16.mxu1 %v827_v49 }
  0x43   : > { %766 = vmatpush1.bf16.msra.mxu0 %v765_v55 }
  0x44   : > { %830 = vmatpush1.bf16.msra.mxu1 %v829_v56  ;;  %768 = vmatprep.subr.bf16.mxu0 %v767_v57 }
  0x45   : > { %832 = vmatprep.subr.bf16.mxu1 %v831_v60 }
  0x47   : > { %770 = vmatpush1.bf16.msra.mxu0 %v769_v63 }
  0x48   : > { %834 = vmatpush1.bf16.msra.mxu1 %v833_v0 }
  0x4a   : > { %422 = vmatmul.mubr.f32.vlgmr.msra.gmra.mrb[0].mxu0 %v227_v1 }
  0x4b   : > { %493 = vmatmul.mubr.f32.vlgmr.msra.gmra.mrb[0].mxu1 %v227_v1 }
 0x11d   : > { %v423_v2 = vpop.f32.mrb[0].mxu0 }
 0x11e   : > { %v499_v3 = vmul.f32 %v423_v2, %v423_v2  ;;  %v494_v4 = vpop.f32.mrb[0].mxu1  ;;  %v425_v5 = vpop.f32.mrb[1].mxu0 }
 0x11f   : > { %v501_v6 = vmul.f32 %v494_v4, %v494_v4  ;;  %v500_v7 = vmul.f32 %v425_v5, %v425_v5  ;;  %v496_v8 = vpop.f32.mrb[1].mxu1 }
 0x120   : > { %v502_v9 = vmul.f32 %v496_v8, %v496_v8 }
 0x121   : > { %v503_v10 = vadd.f32 %v501_v6, %v499_v3 }
 0x122   : > { %v504_v11 = vadd.f32 %v502_v9, %v500_v7 }
 0x123   : > { %861 = vrsqrt.f32 %v503_v10  ;;  %vm507_vm0 = vcmp.eq.f32.partialorder %v503_v10, inf  ;;  %v510_v14 = vand.u32 2147483648, %v503_v10  ;;  %vm509_vm1 = vcmp.eq.f32.partialorder %v503_v10, 0.0 }
 0x124   : > { %863 = vrsqrt.f32 %v504_v11  ;;  %vm514_vm2 = vcmp.eq.f32.partialorder %v504_v11, inf  ;;  %v517_v20 = vand.u32 2147483648, %v504_v11  ;;  %vm516_vm3 = vcmp.eq.f32.partialorder %v504_v11, 0.0 }
 0x12d   : > { %v862_v12 = vpop.eup %861 }
 0x12e   : > { %v506_v13 = vmul.f32 %v862_v12, %v503_v10  ;;  %v864_v17 = vpop.eup %863 }
 0x12f   : > { %v513_v18 = vmul.f32 %v864_v17, %v504_v11 }
 0x130   : > { %v508_v15 = vsel %vm507_vm0, %v503_v10, %v506_v13 }
 0x131   : > { %v511_v16 = vsel %vm509_vm1, %v510_v14, %v508_v15  ;;  %v515_v19 = vsel %vm514_vm2, %v504_v11, %v513_v18 }
 0x132   : > { %519 = vxpose.xlu0.b32.start.end [1/1] (short) %v511_v16, 128  ;;  %v518_v21 = vsel %vm516_vm3, %v517_v20, %v515_v19 }
 0x16f   : > { %551 = vxpose.xlu0.b32.start.end [1/1] (short) (narrow) %v518_v21, 8 }
 0x1b2   : > { %v535_v22 = vpop.trf.xlu0 }
 0x1b3   : > { %584 = vst.msk [vmem:[%s1334_s5] sm:$0xff] %vm583_vm4, %v535_v22 }
 0x1b6   : > { %v536_v23 = vpop.trf.xlu0 }
 0x1b7   : > { %585 = vst.msk [vmem:[%s1334_s5 + $0x8] sm:$0xff] %vm583_vm4, %v536_v23 }
 0x1ba   : > { %v537_v24 = vpop.trf.xlu0 }
 0x1bb   : > { %586 = vst.msk [vmem:[%s1334_s5 + $0x10] sm:$0xff] %vm583_vm4, %v537_v24 }
 0x1be   : > { %v538_v25 = vpop.trf.xlu0 }
 0x1bf   : > { %587 = vst.msk [vmem:[%s1334_s5 + $0x18] sm:$0xff] %vm583_vm4, %v538_v25 }
 0x1c2   : > { %v539_v26 = vpop.trf.xlu0 }
 0x1c3   : > { %588 = vst.msk [vmem:[%s1334_s5 + $0x20] sm:$0xff] %vm583_vm4, %v539_v26 }
 0x1c6   : > { %v540_v27 = vpop.trf.xlu0 }
 0x1c7   : > { %589 = vst.msk [vmem:[%s1334_s5 + $0x28] sm:$0xff] %vm583_vm4, %v540_v27 }
 0x1ca   : > { %v541_v28 = vpop.trf.xlu0 }
 0x1cb   : > { %590 = vst.msk [vmem:[%s1334_s5 + $0x30] sm:$0xff] %vm583_vm4, %v541_v28 }
 0x1ce   : > { %v542_v29 = vpop.trf.xlu0 }
 0x1cf   : > { %591 = vst.msk [vmem:[%s1334_s5 + $0x38] sm:$0xff] %vm583_vm4, %v542_v29 }
 0x1d2   : > { %v543_v30 = vpop.trf.xlu0 }
 0x1d3   : > { %592 = vst.msk [vmem:[%s1334_s5 + $0x40] sm:$0xff] %vm583_vm4, %v543_v30 }
 0x1d6   : > { %v544_v31 = vpop.trf.xlu0 }
 0x1d7   : > { %593 = vst.msk [vmem:[%s1334_s5 + $0x48] sm:$0xff] %vm583_vm4, %v544_v31 }
 0x1da   : > { %v545_v32 = vpop.trf.xlu0 }
 0x1db   : > { %594 = vst.msk [vmem:[%s1334_s5 + $0x50] sm:$0xff] %vm583_vm4, %v545_v32 }
 0x1de   : > { %v546_v33 = vpop.trf.xlu0 }
 0x1df   : > { %595 = vst.msk [vmem:[%s1334_s5 + $0x58] sm:$0xff] %vm583_vm4, %v546_v33 }
 0x1e2   : > { %v547_v34 = vpop.trf.xlu0 }
 0x1e3   : > { %596 = vst.msk [vmem:[%s1334_s5 + $0x60] sm:$0xff] %vm583_vm4, %v547_v34 }
 0x1e6   : > { %v548_v35 = vpop.trf.xlu0 }
 0x1e7   : > { %597 = vst.msk [vmem:[%s1334_s5 + $0x68] sm:$0xff] %vm583_vm4, %v548_v35 }
 0x1ea   : > { %v549_v36 = vpop.trf.xlu0 }
 0x1eb   : > { %598 = vst.msk [vmem:[%s1334_s5 + $0x70] sm:$0xff] %vm583_vm4, %v549_v36 }
 0x1ee   : > { %v550_v37 = vpop.trf.xlu0 }
 0x1ef   : > { %599 = vst.msk [vmem:[%s1334_s5 + $0x78] sm:$0xff] %vm583_vm4, %v550_v37 }
 0x1f2   : > { %v567_v38 = vpop.trf.xlu0 }
 0x1f3   : > { %601 = vst.msk [vmem:[%s1334_s5 + $0x80] sm:$0x1] %vm600_vm5, %v567_v38 }
 0x1f4 PF: > { %s13_s14 = sadd.s32 1, %s887_s14   ;;  %s1382_s12 = smov %s883_s13 }
 0x1f5   : > { %p10_p5 = scmp.ge.s32.totalorder %s13_s14, 4   ;;  %s1383_s13 = smov %s1385_s15 }
 0x1f7   :  { %12 = sbr.rel (!%p10_p5) target bundleno = 2 (0x2), region = 65 }

</bundles_post_ra>
